<compile_context>
chip_gen: v5e
topology: v5e:2x2
jax: 0.10.0
libtpu: 0.0.40
codegen_flags: <defaults>
</compile_context>

<pallas_src>
import jax
import jax.numpy as jnp
from jax.experimental import pallas as pl
from jax.experimental.pallas import tpu as pltpu


def _rope_kernel(pos_ref, inv_ref, cos_ref, sin_ref):
    # pos_ref: (1, TS, 1) int32   (seq on sublanes)
    # inv_ref: (1, D/2) float32   (freqs on lanes, broadcast across grid)
    # cos_ref / sin_ref: (1, TS, D) output blocks
    half = inv_ref.shape[-1]
    pos = pos_ref[0].astype(jnp.float32)        # (TS, 1)  — cast is VPU filler
    inv = inv_ref[...]                          # (1, half)
    freqs = pos * inv                           # (TS, half) broadcast, no relayout
    # Transcendentals only on the unique half; cast BEFORE duplicating so the
    # duplicated copy / store traffic is in the (narrower) output dtype.
    c = jnp.cos(freqs).astype(cos_ref.dtype)
    s = jnp.sin(freqs).astype(sin_ref.dtype)
    if half % 128 == 0:
        # head_dim 256: two lane-dense half-width stores, no concat copy.
        cos_ref[0, :, :half] = c
        cos_ref[0, :, half:] = c
        sin_ref[0, :, :half] = s
        sin_ref[0, :, half:] = s
    else:
        # head_dim 128 etc.: concat after cast, single full-width store.
        cos_ref[0] = jnp.concatenate([c, c], axis=-1)
        sin_ref[0] = jnp.concatenate([s, s], axis=-1)


def _plan_tiles(B, S, cap=2048):
    """Pick (seq_tile, padded_S, num_seq_tiles).

    seq_tile is always a multiple of 8 (never tiny), padded_S a multiple of
    seq_tile.  If B == 1 and there would be only one grid step, split the
    sequence in two so both v7x TensorCores get work.
    """
    s8 = -(-S // 8) * 8                       # pad S up to a multiple of 8
    if s8 <= cap:
        ts, s_pad = s8, s8
    else:
        ts = cap
        s_pad = -(-s8 // ts) * ts
    n_s = s_pad // ts
    if B == 1 and n_s == 1 and s8 > 8:
        s_pad = -(-S // 16) * 16              # multiple of 16 -> halves are x8
        ts = s_pad // 2
        n_s = 2
    return ts, s_pad, n_s


def _rope_pallas(out_dtype, position_ids, dim, base):
    assert dim % 2 == 0, "rotary head_dim must be even"
    B, S = position_ids.shape
    half = dim // 2

    # Deterministic "parameter" setup (same formula as the module __init__).
    inv_freq = 1.0 / (base ** (jnp.arange(0, dim, 2, dtype=jnp.float32) / dim))
    inv_freq = inv_freq.reshape(1, half)

    ts, s_pad, n_s = _plan_tiles(B, S)

    # Positions as (B, S_pad, 1) int32 — seq axis ends up on sublanes in-kernel.
    pos = position_ids.astype(jnp.int32).reshape(B, S, 1)
    if s_pad != S:
        pos = jnp.pad(pos, ((0, 0), (0, s_pad - S), (0, 0)))

    out_bytes = jnp.dtype(out_dtype).itemsize
    cost = pl.CostEstimate(
        flops=2 * B * s_pad * half,                 # outer product + dup copies
        transcendentals=2 * B * s_pad * half,       # sin + cos on unique half only
        bytes_accessed=B * s_pad * 4 + half * 4 + 2 * B * s_pad * dim * out_bytes,
    )

    cos, sin = pl.pallas_call(
        _rope_kernel,
        out_shape=(
            jax.ShapeDtypeStruct((B, s_pad, dim), out_dtype),
            jax.ShapeDtypeStruct((B, s_pad, dim), out_dtype),
        ),
        grid_spec=pltpu.PrefetchScalarGridSpec(
            num_scalar_prefetch=0,
            grid=(B, n_s),
            in_specs=[
                pl.BlockSpec((1, ts, 1), lambda b, s: (b, s, 0)),   # positions
                pl.BlockSpec((1, half), lambda b, s: (0, 0)),       # inv_freq
            ],
            out_specs=[
                pl.BlockSpec((1, ts, dim), lambda b, s: (b, s, 0)),
                pl.BlockSpec((1, ts, dim), lambda b, s: (b, s, 0)),
            ],
        ),
        compiler_params=pltpu.CompilerParams(
            dimension_semantics=("parallel", "parallel"),
        ),
        cost_estimate=cost,
    )(pos, inv_freq)

    if s_pad != S:
        cos = cos[:, :S, :]
        sin = sin[:, :S, :]
    return cos, sin


def gemma_rotary_embedding(x, position_ids, dim, base=10000.0,
                           shared_positions=False):
    """Pallas implementation of GemmaRotatoryEmbedding.forward.

    Returns (cos, sin), each (B, S, dim) with dtype == x.dtype.
    shared_positions=True: caller guarantees all batch rows share the same
    position_ids; compute once and broadcast (B-fold less compute + HBM writes).
    """
    B = position_ids.shape[0]
    if shared_positions and B > 1:
        cos, sin = _rope_pallas(x.dtype, position_ids[:1], dim, base)
        cos = jnp.broadcast_to(cos, (B,) + cos.shape[1:])
        sin = jnp.broadcast_to(sin, (B,) + sin.shape[1:])
        return cos, sin
    return _rope_pallas(x.dtype, position_ids, dim, base)


def _reference(x, position_ids, dim, base=10000.0):
    inv_freq = 1.0 / (base ** (jnp.arange(0, dim, 2, dtype=jnp.float32) / dim))
    freqs = position_ids.astype(jnp.float32)[:, :, None] * inv_freq[None, None, :]
    emb = jnp.concatenate([freqs, freqs], axis=-1)
    return jnp.cos(emb).astype(x.dtype), jnp.sin(emb).astype(x.dtype)


if __name__ == "__main__":
    key = jax.random.PRNGKey(0)
    # Gemma-shaped small test: head_dim=128 keeps output stores lane-dense.
    B, H, S, head_dim = 2, 4, 16, 128

    # x only contributes its dtype (as in the PyTorch module); bf16 exercises
    # the final cast.
    x = jax.random.normal(key, (B, H, S, head_dim), dtype=jnp.float32).astype(jnp.bfloat16)
    position_ids = jnp.broadcast_to(jnp.arange(S, dtype=jnp.int32)[None, :], (B, S))

    cos, sin = gemma_rotary_embedding(x, position_ids, dim=head_dim, base=10000.0)
    cos = jax.block_until_ready(cos)
    sin = jax.block_until_ready(sin)

    cos_ref, sin_ref = _reference(x, position_ids, dim=head_dim)
    assert cos.shape == (B, S, head_dim) and sin.shape == (B, S, head_dim)
    assert cos.dtype == x.dtype and sin.dtype == x.dtype
    assert jnp.allclose(cos.astype(jnp.float32), cos_ref.astype(jnp.float32), atol=2e-2)
    assert jnp.allclose(sin.astype(jnp.float32), sin_ref.astype(jnp.float32), atol=2e-2)

    # Shared-positions fast path (all batch rows identical) must match too.
    cos2, sin2 = gemma_rotary_embedding(x, position_ids, dim=head_dim,
                                        shared_positions=True)
    cos2 = jax.block_until_ready(cos2)
    sin2 = jax.block_until_ready(sin2)
    assert cos2.shape == (B, S, head_dim) and cos2.dtype == x.dtype
    assert jnp.allclose(cos2.astype(jnp.float32), cos_ref.astype(jnp.float32), atol=2e-2)
    assert jnp.allclose(sin2.astype(jnp.float32), sin_ref.astype(jnp.float32), atol=2e-2)

    # Non-multiple-of-8 sequence length exercises padding + tail slicing.
    S2 = 20
    pos_odd = jnp.broadcast_to(jnp.arange(S2, dtype=jnp.int32)[None, :], (1, S2))
    x_small = x[:1, :, :1, :]   # dtype carrier only
    cos3, sin3 = gemma_rotary_embedding(x_small, pos_odd, dim=head_dim)
    cos3 = jax.block_until_ready(cos3)
    sin3 = jax.block_until_ready(sin3)
    cos3_ref, sin3_ref = _reference(x_small, pos_odd, dim=head_dim)
    assert cos3.shape == (1, S2, head_dim)
    assert jnp.allclose(cos3.astype(jnp.float32), cos3_ref.astype(jnp.float32), atol=2e-2)
    assert jnp.allclose(sin3.astype(jnp.float32), sin3_ref.astype(jnp.float32), atol=2e-2)

    print("KERNEL_OK")
</pallas_src>

<mosaic_0001>
module attributes {stable_mosaic.version = 11 : i64} {
  func.func @_rope_kernel(%arg0: i32, %arg1: i32, %arg2: memref<1x16x1xi32, #tpu.memory_space<vmem>>, %arg3: memref<1x64xf32, #tpu.memory_space<vmem>>, %arg4: memref<1x16x128xbf16, #tpu.memory_space<vmem>>, %arg5: memref<1x16x128xbf16, #tpu.memory_space<vmem>>) attributes {dimension_semantics = [#tpu.dimension_semantics<parallel>, #tpu.dimension_semantics<parallel>], iteration_bounds = array<i64: 2, 1>, scalar_prefetch = 0 : i64, scratch_operands = 0 : i64, tpu.core_type = #tpu.core_type<tc>, window_params = [{transform_indices = @transform_0, window_bounds = array<i64: 1, 16, 1>}, {pipeline_mode = #tpu.pipeline_mode<synchronous>, transform_indices = @transform_1, window_bounds = array<i64: 1, 64>}, {transform_indices = @transform_2, window_bounds = array<i64: 1, 16, 128>}, {transform_indices = @transform_3, window_bounds = array<i64: 1, 16, 128>}]} {
    %c0 = arith.constant 0 : index
    %c0_0 = arith.constant 0 : index
    %c0_1 = arith.constant 0 : index
    %0 = vector.load %arg2[%c0, %c0_0, %c0_1] : memref<1x16x1xi32, #tpu.memory_space<vmem>>, vector<1x16x1xi32>
    %1 = vector.shape_cast %0 : vector<1x16x1xi32> to vector<16x1xi32>
    %2 = arith.sitofp %1 : vector<16x1xi32> to vector<16x1xf32>
    %c0_2 = arith.constant 0 : index
    %c0_3 = arith.constant 0 : index
    %3 = vector.load %arg3[%c0_2, %c0_3] : memref<1x64xf32, #tpu.memory_space<vmem>>, vector<1x64xf32>
    %4 = vector.broadcast %2 : vector<16x1xf32> to vector<16x64xf32>
    %5 = vector.broadcast %3 : vector<1x64xf32> to vector<16x64xf32>
    %6 = arith.mulf %4, %5 : vector<16x64xf32>
    %7 = math.cos %6 : vector<16x64xf32>
    %8 = arith.truncf %7 : vector<16x64xf32> to vector<16x64xbf16>
    %9 = math.sin %6 : vector<16x64xf32>
    %10 = arith.truncf %9 : vector<16x64xf32> to vector<16x64xbf16>
    %11 = tpu.concatenate %8, %8 in 1 : vector<16x64xbf16>, vector<16x64xbf16> -> vector<16x128xbf16>
    %c0_4 = arith.constant 0 : index
    %c0_5 = arith.constant 0 : index
    %c0_6 = arith.constant 0 : index
    %12 = vector.load %arg4[%c0_4, %c0_5, %c0_6] : memref<1x16x128xbf16, #tpu.memory_space<vmem>>, vector<1x16x128xbf16>
    %13 = vector.shape_cast %12 : vector<1x16x128xbf16> to vector<16x128xbf16>
    %14 = vector.shape_cast %11 : vector<16x128xbf16> to vector<1x16x128xbf16>
    tpu.vector_store %arg4[%c0_4, %c0_5, %c0_6], %14 {strides = array<i32>} : memref<1x16x128xbf16, #tpu.memory_space<vmem>>, vector<1x16x128xbf16>,
    %15 = tpu.concatenate %10, %10 in 1 : vector<16x64xbf16>, vector<16x64xbf16> -> vector<16x128xbf16>
    %c0_7 = arith.constant 0 : index
    %c0_8 = arith.constant 0 : index
    %c0_9 = arith.constant 0 : index
    %16 = vector.load %arg5[%c0_7, %c0_8, %c0_9] : memref<1x16x128xbf16, #tpu.memory_space<vmem>>, vector<1x16x128xbf16>
    %17 = vector.shape_cast %16 : vector<1x16x128xbf16> to vector<16x128xbf16>
    %18 = vector.shape_cast %15 : vector<16x128xbf16> to vector<1x16x128xbf16>
    tpu.vector_store %arg5[%c0_7, %c0_8, %c0_9], %18 {strides = array<i32>} : memref<1x16x128xbf16, #tpu.memory_space<vmem>>, vector<1x16x128xbf16>,
    return
  }
  func.func @transform_0(%arg0: i32, %arg1: i32) -> (i32, i32, i32) {
    %c0_i32 = arith.constant 0 : i32
    %c0_i32_0 = arith.constant 0 : i32
    return %arg0, %arg1, %c0_i32 : i32, i32, i32
  }
  func.func @transform_1(%arg0: i32, %arg1: i32) -> (i32, i32) {
    %c0_i32 = arith.constant 0 : i32
    %c0_i32_0 = arith.constant 0 : i32
    %c0_i32_1 = arith.constant 0 : i32
    return %c0_i32, %c0_i32_0 : i32, i32
  }
  func.func @transform_2(%arg0: i32, %arg1: i32) -> (i32, i32, i32) {
    %c0_i32 = arith.constant 0 : i32
    %c0_i32_0 = arith.constant 0 : i32
    return %arg0, %arg1, %c0_i32 : i32, i32, i32
  }
  func.func @transform_3(%arg0: i32, %arg1: i32) -> (i32, i32, i32) {
    %c0_i32 = arith.constant 0 : i32
    %c0_i32_0 = arith.constant 0 : i32
    return %arg0, %arg1, %c0_i32 : i32, i32, i32
  }
}

</mosaic_0001>

<bundles_post_ra>
// kernel: tpu_custom_call.1
= control target key start
LH: loop header
LB: loop body
LE: loop exit
PB: predicated region body
PF: predicated region fallthrough
CT: control target
= control target key end

     0   :  { %9 = vsyncpa [#allocation3], 0  ;;  %s1628_s0 = inlined_call_operand.vmem [shape: s32[2,16,1], index: 0, kind: input, shape index: {}]   ;;  %s1629_s1 = inlined_call_operand.vmem [shape: f32[1,64], index: 1, kind: input, shape index: {}]   ;;  %s1630_s2 = inlined_call_operand.hbm [shape: bf16[2,16,128], index: 2, kind: output, shape index: {0}]   ;;  %s1631_s3 = inlined_call_operand.hbm [shape: bf16[2,16,128], index: 3, kind: output, shape index: {1}]  }
   0x1   :  { %11 = vsyncpa [#allocation3 + $0x1], 0 }
   0x2   :  { %12 = vsyncpa [#allocation5], 0 }
   0x3   :  { %14 = vsyncpa [#allocation5 + $0x1], 0  ;;  %s1296_s12 = smov 0   ;;  %s1298_s13 = smov 0  }
   0x4   :  { %s1300_s14 = smov 0   ;;  %s1302_s15 = smov 0  }
   0x5   :  { %s1304_s16 = smov 0   ;;  %s1306_s17 = smov 0  }
   0x6 LB: > { %s1052_s18 = sadd.s32 4294967295, %s1265_s17   ;;  %s1053_s19 = sadd.s32 4294967294, %s1265_s17   ;;  %s1265_s17 = sphi %s1306_s17, %s20_s17   ;;  %s1261_s16 = sphi %s1304_s16, %s1642_s16   ;;  %s1257_s15 = sphi %s1302_s15, %s1641_s15   ;;  %s1253_s14 = sphi %s1300_s14, %s1640_s14   ;;  %s1249_s13 = sphi %s1298_s13, %s1639_s13   ;;  %s1245_s12 = sphi %s1296_s12, %s1638_s12  }
   0x7   : > { %s32_s20 = sadd.s32 1, %s1261_s16  ;;  %s90_s21 = sadd.s32 1, %s1253_s14 }
   0x8   : > { %p34_p0 = scmp.ge.s32.totalorder %s32_s20, 2  ;;  %p100_p1 = scmp.ne.s32.totalorder %s1253_s14, %s1249_s13 }
   0x9   : > { %p101_p2 = scmp.eq.s32.totalorder %s1052_s18, 1  ;;  %p106_p3 = scmp.ne.s32.totalorder %s1249_s13, %s1245_s12 }
   0xa   : > { %s1644_s20 = smov (%p34_p0, %s32_s20), 0  ;;  %p107_p5 = scmp.eq.s32.totalorder %s1053_s19, 1 }
   0xb   : > { %p1336_p4 = por %p101_p2, %p100_p1  ;;  %s85_s23 = ssub.s32 %s1261_s16, %s1644_s20 }
   0xc   : > { %p1056_p6 = scmp.ge.s32.totalorder %s1265_s17, 1  ;;  %p88_p7 = scmp.eq.s32.totalorder %s85_s23, 0 }
   0xd   : > { %p1343_p8 = por %p107_p5, %p106_p3  ;;  %p169_p9 = scmp.lt.s32.totalorder %s1265_s17, 3 }
   0xe   : > { %s1349_s25 = scalar_select %p88_p7, %s1253_s14, %s90_s21  }
   0xf   : > { %p170_p10 = pnand %p1056_p6, %p169_p9 }
  0x10   : > { %p203_p11 = scmp.lt.s32.totalorder (!%p170_p10), %s1257_s15, 1  ;;  %s1274_s6 = smov (!%p170_p10), 64  }
  0x11   : > { %173 = sbr.rel (%p170_p10) target bundleno = 404 (0x194), region = 28  ;;  %s1562_s7 = sand.u32 (!%p170_p10), 1, %s1249_s13  }
  0x12   : > { %s1082_s8 = sshll.u32 (!%p170_p10), %s1257_s15, 3  ;;  %s1057_s9 = sshll.u32 (!%p170_p10), %s1562_s7, 3 }
  0x13   : > { %s914_s18 = scalar_lea.hbm (!%p170_p10), %s1630_s2, %s1082_s8  ;;  %s194_s19 = scalar_lea.vmem (!%p170_p10), [#allocation2], %s1057_s9 }
  0x14   : > { %s915_s21 = sshll.u32 (!%p170_p10), %s194_s19, 4  ;;  %s917_s23 = sshll.u32 (!%p170_p10), %s914_s18, 4  ;;  %s916_s21 = int_to_ptr.vmem [resolvable:$true] %s915_s21  ;;  %s918_s23 = int_to_ptr.hbm [resolvable:$true] %s917_s23 }
  0x15   : > { %s896_s28 = scalar_lea.sflag (!%p170_p10), [#allocation3], %s1562_s7  ;;  %s1169_s29 = sshra.s32 (!%p170_p10), %s918_s23, 4  ;;  %s1170_s29 = int_to_ptr.hbm [resolvable:$true] %s1169_s29 }
  0x16   : > { %v1267_v0 = vmov 0   ;;  %s204_s26 = scalar_select %p203_p11, %s1257_s15, 1  ;;  %v1154_v5 = vld [vmem:[%s1629_s1] ss:$0 sm:$0xff]  ;;  %v1268_v24 = vmov 683565275  }
  0x17   : > { %1153 = vset.pattern.permute.xlu0 %v1267_v0  ;;  %v1269_v26 = vmov 2475754826   ;;  %v1270_v30 = vmov 2131351028   ;;  %v1271_v33 = vmov 2102212464   ;;  %p1176_p1 = scmp.lt.s32.totalorder %s1170_s29, %s1630_s2 }
  0x18   : > { %s1081_s27 = sshll.u32 %s204_s26, 4  ;;  %v1272_v36 = vmov 920167782   ;;  %v1273_v39 = vmov 1326507024   ;;  %s1175_s10 = scalar_lea.hbm %s1630_s2, 16 }
  0x19   : > { %s210_s30 = scalar_lea.vmem %s1628_s0, %s1081_s27  ;;  %s933_s27 = scalar_lea.hbm %s1631_s3, %s1082_s8 }
  0x1a   : > { %v214_v1 = vld [vmem:[%s210_s30] sm:$0xff]  ;;  %v215_v3 = vld [vmem:[%s210_s30 + $0x8] sm:$0xff]  ;;  %s1171_s30 = scalar_lea.hbm %s1170_s29, 8 }
  0x1b   : > { %v216_v2 = vcvt.s32.f32 %v214_v1  ;;  %v217_v4 = vcvt.s32.f32 %v215_v3  ;;  %p1172_p12 = scmp.ne.s32.totalorder %s1170_s29, %s1171_s30  ;;  %p1177_p2 = scmp.lt.s32.totalorder %s1175_s10, %s1171_s30 }
  0x1d   : > { %221 = vperm.xlu0 %1153, %v216_v2   ;;  %p1173_p13 = pnand %p1172_p12, %p1336_p4  ;;  %p1178_p3 = por %p1177_p2, %p1176_p1 }
  0x1f   : > { %p1174_p0 = pneg %p1173_p13 }
  0x21   : > { %p1179_p5 = pnand %p1178_p3, %p1174_p0 }
  0x25   : > { %226 = vperm.xlu0 %1153, %v217_v4  }
  0x8f   : > { %v222_v6 = vpop.permute.xlu0 %221 }
  0x90   : > { %v1360_v7 = vmul.f32 %v1154_v5, %v222_v6 }
  0x92   : > { %v237_v8 = vand.u32 2139095040, %v1360_v7  ;;  %v234_v10 = vand.u32 2147483647, %v1360_v7 }
  0x94   : > { %v238_v9 = vshrl.u32 %v237_v8, 23  ;;  %v241_v15 = vand.u32 8388607, %v234_v10 }
  0x96   : > { %v1061_v11 = vadd.s32 4294967169, %v238_v9  ;;  %v242_v20 = vor.u32 8388608, %v241_v15 }
  0x97   : > { %v227_v12 = vpop.permute.xlu0 %226 }
  0x98   : > { %v244_v13 = vadd.s32 1, %v1061_v11  ;;  %v1364_v14 = vmul.f32 %v1154_v5, %v227_v12  ;;  %v1382_v48 = vshll.u32 %v242_v20, 8 }
  0x9a   : > { %vm245_vm0 = vcmp.gt.s32.totalorder %v244_v13, 0  ;;  %v388_v17 = vand.u32 2147483647, %v1364_v14  ;;  %v391_v18 = vand.u32 2139095040, %v1364_v14  ;;  %v1394_v58 = vand.u32 65535, %v1382_v48 }
  0x9b   : > { %v246_v16 = vsel %vm245_vm0, %v244_v13, 0  ;;  %v284_v5 = vshrl.u32 %v1382_v48, 16 }
  0x9c   : > { %v248_v19 = vand.u32 31, %v246_v16  ;;  %v392_v22 = vshrl.u32 %v391_v18, 23  ;;  %v1370_v23 = vshrl.u32 %v246_v16, 5  ;;  %v395_v28 = vand.u32 8388607, %v388_v17 }
  0x9e   : > { %v249_v21 = vsub.s32 32, %v248_v19  ;;  %v251_v25 = vshll.u32 %v1268_v24, %v248_v19  ;;  %v254_v27 = vshll.u32 %v1269_v26, %v248_v19  ;;  %v257_v32 = vshll.u32 %v1270_v30, %v248_v19 }
  0x9f   : > { %v260_v35 = vshll.u32 %v1271_v33, %v248_v19  ;;  %v263_v38 = vshll.u32 %v1272_v36, %v248_v19  ;;  %v1064_v44 = vadd.s32 4294967169, %v392_v22  ;;  %vm266_vm1 = vcmp.lt.s32.totalorder %v1370_v23, 1 }
  0xa0   : > { %v252_v29 = vshrl.u32 %v1269_v26, %v249_v21  ;;  %v255_v31 = vshrl.u32 %v1270_v30, %v249_v21  ;;  %v258_v34 = vshrl.u32 %v1271_v33, %v249_v21  ;;  %v261_v37 = vshrl.u32 %v1272_v36, %v249_v21 }
  0xa1   : > { %v264_v40 = vshrl.u32 %v1273_v39, %v249_v21  ;;  %vm268_vm2 = vcmp.lt.s32.totalorder %v1370_v23, 3  ;;  %vm269_vm3 = vcmp.lt.s32.totalorder %v1370_v23, 4  ;;  %v396_v51 = vor.u32 8388608, %v395_v28 }
  0xa2   : > { %v253_v41 = vor.u32 %v252_v29, %v251_v25  ;;  %v256_v42 = vor.u32 %v255_v31, %v254_v27  ;;  %v259_v43 = vor.u32 %v258_v34, %v257_v32  ;;  %v262_v45 = vor.u32 %v261_v37, %v260_v35 }
  0xa3   : > { %v265_v46 = vor.u32 %v264_v40, %v263_v38  ;;  %v398_v52 = vadd.s32 1, %v1064_v44  ;;  %vm267_vm4 = vcmp.lt.s32.totalorder %v1370_v23, 2  ;;  %v250_v61 = vshrl.u32 %v1268_v24, %v249_v21 }
  0xa4   : > { %v278_v47 = vsel %vm266_vm1, %v256_v42, %v259_v43  ;;  %v275_v49 = vsel %vm269_vm3, %v262_v45, 920167782  ;;  %v274_v53 = vsel %vm266_vm1, %v253_v41, %v256_v42  ;;  %v271_v57 = vsel %vm269_vm3, %v259_v43, 2102212464 }
  0xa5   : > { %v279_v50 = vsel %vm269_vm3, %v265_v46, 1326507024  ;;  %v276_v54 = vsel %vm268_vm2, %v259_v43, %v275_v49  ;;  %vm399_vm5 = vcmp.gt.s32.totalorder %v398_v52, 0  ;;  %v1401_v1 = vshll.u32 %v396_v51, 8 }
  0xa6   : > { %v280_v55 = vsel %vm268_vm2, %v262_v45, %v279_v50  ;;  %v1399_v62 = vsel %vm267_vm4, %v274_v53, %v276_v54  ;;  %v400_v63 = vsel %vm399_vm5, %v398_v52, 0  ;;  %v270_v3 = vsel %vm266_vm1, %v250_v61, %v253_v41 }
  0xa7   : > { %v281_v56 = vsel %vm267_vm4, %v278_v47, %v280_v55  ;;  %v272_v4 = vsel %vm268_vm2, %v256_v42, %v271_v57  ;;  %v307_v9 = vand.u32 65535, %v1399_v62  ;;  %v402_v11 = vand.u32 31, %v400_v63 }
  0xa8   : > { %v285_v59 = vand.u32 65535, %v281_v56  ;;  %v286_v60 = vshrl.u32 %v281_v56, 16  ;;  %v308_v13 = vshrl.u32 %v1399_v62, 16  ;;  %v1418_v15 = vand.u32 65535, %v1401_v1 }
  0xa9   : > { %v1421_v16 = vshrl.u32 %v1401_v1, 16  ;;  %v1423_v19 = vshrl.u32 %v400_v63, 5  ;;  %v1425_v20 = vsub.s32 32, %v402_v11  ;;  %v405_v25 = vshll.u32 %v1268_v24, %v402_v11 }
  0xaa   : > { %v1404_v2 = vmul.u32 %v286_v60, %v1394_v58  ;;  %v287_v6 = vmul.u32 %v285_v59, %v1394_v58  ;;  %v1414_v12 = vmul.u32 %v285_v59, %v284_v5  ;;  %v290_v18 = vmul.u32 %v286_v60, %v284_v5 }
  0xab   : > { %v408_v27 = vshll.u32 %v1269_v26, %v402_v11  ;;  %v406_v28 = vshrl.u32 %v1269_v26, %v1425_v20  ;;  %v409_v29 = vshrl.u32 %v1270_v30, %v1425_v20  ;;  %v411_v31 = vshll.u32 %v1270_v30, %v402_v11 }
  0xac   : > { %v291_v8 = vshll.u32 %v1404_v2, 16  ;;  %v414_v32 = vshll.u32 %v1271_v33, %v402_v11  ;;  %v412_v34 = vshrl.u32 %v1271_v33, %v1425_v20  ;;  %v415_v35 = vshrl.u32 %v1272_v36, %v1425_v20 }
  0xad   : > { %v417_v37 = vshll.u32 %v1272_v36, %v402_v11  ;;  %v418_v38 = vshrl.u32 %v1273_v39, %v1425_v20  ;;  %v293_v40 = vshll.u32 %v1414_v12, 16  ;;  %v1437_v42 = vor.u32 %v406_v28, %v405_v25 }
  0xae   : > { %vm295_vm6 = vc.u32 %v287_v6, %v291_v8  ;;  %v297_v22 = vadd.s32 %v291_v8, %v287_v6  ;;  %v1439_v43 = vor.u32 %v409_v29, %v408_v27  ;;  %v1441_v44 = vor.u32 %v412_v34, %v411_v31 }
  0xaf   : > { %v296_v21 = vsel %vm295_vm6, 1, %v1267_v0  ;;  %v416_v26 = vor.u32 %v415_v35, %v414_v32  ;;  %v419_v45 = vor.u32 %v418_v38, %v417_v37  ;;  %vm420_vm7 = vcmp.lt.s32.totalorder %v1423_v19, 1 }
  0xb0   : > { %v298_v41 = vadd.s32 %v296_v21, %v290_v18  ;;  %v310_v30 = vmul.u32 %v308_v13, %v1394_v58  ;;  %vm423_vm8 = vcmp.lt.s32.totalorder %v1423_v19, 4  ;;  %v428_v33 = vsel %vm420_vm7, %v1437_v42, %v1439_v43 }
  0xb1   : > { %vm299_vm9 = vc.u32 %v297_v22, %v293_v40  ;;  %vm422_vm10 = vcmp.lt.s32.totalorder %v1423_v19, 3  ;;  %v429_v36 = vsel %vm423_vm8, %v416_v26, 920167782  ;;  %v432_v39 = vsel %vm420_vm7, %v1439_v43, %v1441_v44 }
  0xb2   : > { %v433_v46 = vsel %vm423_vm8, %v419_v45, 1326507024  ;;  %vm421_vm11 = vcmp.lt.s32.totalorder %v1423_v19, 2  ;;  %v430_v47 = vsel %vm422_vm10, %v1441_v44, %v429_v36  ;;  %v300_v50 = vsel %vm299_vm9, 1, %v1267_v0 }
  0xb3   : > { %v434_v49 = vsel %vm422_vm10, %v416_v26, %v433_v46  ;;  %v311_v51 = vmul.u32 %v307_v9, %v284_v5  ;;  %v431_v52 = vsel %vm421_vm11, %v428_v33, %v430_v47  ;;  %v302_v54 = vadd.s32 %v300_v50, %v298_v41 }
  0xb4   : > { %v435_v53 = vsel %vm421_vm11, %v432_v39, %v434_v49  ;;  %v462_v57 = vshrl.u32 %v431_v52, 16  ;;  %v313_v59 = vshll.u32 %v310_v30, 16  ;;  %v1472_v60 = vsel %vm267_vm4, %v270_v3, %v272_v4 }
  0xb5   : > { %v439_v55 = vand.u32 65535, %v435_v53  ;;  %v440_v56 = vshrl.u32 %v435_v53, 16  ;;  %v461_v61 = vand.u32 65535, %v431_v52  ;;  %v292_v62 = vshrl.u32 %v1404_v2, 16 }
  0xb6   : > { %v309_v63 = vmul.u32 %v307_v9, %v1394_v58  ;;  %v312_v6 = vmul.u32 %v308_v13, %v284_v5  ;;  %v464_v18 = vmul.u32 %v462_v57, %v1418_v15  ;;  %v294_v21 = vshrl.u32 %v1414_v12, 16 }
  0xb7   : > { %v442_v8 = vmul.u32 %v440_v56, %v1418_v15  ;;  %v443_v11 = vmul.u32 %v439_v55, %v1421_v16  ;;  %v303_v22 = vadd.s32 %v302_v54, %v292_v62  ;;  %v315_v25 = vshll.u32 %v311_v51, 16 }
  0xb8   : > { %v441_v23 = vmul.u32 %v439_v55, %v1418_v15  ;;  %v444_v3 = vmul.u32 %v440_v56, %v1421_v16  ;;  %vm317_vm12 = vc.u32 %v309_v63, %v313_v59  ;;  %v465_v58 = vmul.u32 %v461_v61, %v1421_v16 }
  0xb9   : > { %v445_v4 = vshll.u32 %v442_v8, 16  ;;  %v447_v2 = vshll.u32 %v443_v11, 16  ;;  %v318_v5 = vsel %vm317_vm12, 1, %v1267_v0  ;;  %v319_v9 = vadd.s32 %v313_v59, %v309_v63 }
  0xba   : > { %v320_v27 = vadd.s32 %v318_v5, %v312_v6  ;;  %v467_v28 = vshll.u32 %v464_v18, 16  ;;  %v463_v29 = vmul.u32 %v461_v61, %v1418_v15  ;;  %v314_v31 = vshrl.u32 %v310_v30, 16 }
  0xbb   : > { %vm449_vm13 = vc.u32 %v441_v23, %v445_v4  ;;  %v451_v13 = vadd.s32 %v445_v4, %v441_v23  ;;  %vm321_vm14 = vc.u32 %v319_v9, %v315_v25  ;;  %v466_v34 = vmul.u32 %v462_v57, %v1421_v16 }
  0xbc   : > { %v450_v12 = vsel %vm449_vm13, 1, %v1267_v0  ;;  %v322_v35 = vsel %vm321_vm14, 1, %v1267_v0  ;;  %v304_v37 = vadd.s32 %v303_v22, %v294_v21  ;;  %v446_v40 = vshrl.u32 %v442_v8, 16 }
  0xbd   : > { %v452_v32 = vadd.s32 %v450_v12, %v444_v3  ;;  %vm453_vm15 = vc.u32 %v451_v13, %v447_v2  ;;  %v324_v38 = vadd.s32 %v322_v35, %v320_v27  ;;  %v469_v45 = vshll.u32 %v465_v58, 16 }
  0xbe   : > { %v454_v41 = vsel %vm453_vm15, 1, %v1267_v0  ;;  %vm471_vm0 = vc.u32 %v463_v29, %v467_v28  ;;  %v473_v33 = vadd.s32 %v467_v28, %v463_v29  ;;  %v425_v15 = vsel %vm423_vm8, %v1441_v44, 2102212464 }
  0xbf   : > { %v456_v26 = vadd.s32 %v454_v41, %v452_v32  ;;  %v316_v30 = vshrl.u32 %v311_v51, 16  ;;  %v325_v36 = vadd.s32 %v324_v38, %v314_v31  ;;  %v472_v16 = vsel %vm471_vm0, 1, %v1267_v0 }
  0xc0   : > { %v323_v39 = vadd.s32 %v319_v9, %v315_v25  ;;  %v474_v47 = vadd.s32 %v472_v16, %v466_v34  ;;  %vm475_vm1 = vc.u32 %v473_v33, %v469_v45  ;;  %v404_v49 = vshrl.u32 %v1268_v24, %v1425_v20 }
  0xc1   : > { %v457_v46 = vadd.s32 %v456_v26, %v446_v40  ;;  %v326_v50 = vadd.s32 %v325_v36, %v316_v30  ;;  %v448_v52 = vshrl.u32 %v443_v11, 16  ;;  %v476_v53 = vsel %vm475_vm1, 1, %v1267_v0 }
  0xc2   : > { %vm329_vm2 = vc.u32 %v304_v37, %v323_v39  ;;  %v468_v54 = vshrl.u32 %v464_v18, 16  ;;  %v478_v55 = vadd.s32 %v476_v53, %v474_v47  ;;  %v424_v44 = vsel %vm420_vm7, %v404_v49, %v1437_v42 }
  0xc3   : > { %v426_v51 = vsel %vm422_vm10, %v1439_v43, %v425_v15  ;;  %v330_v56 = vadd.s32 1, %v326_v50  ;;  %v458_v57 = vadd.s32 %v457_v46, %v448_v52  ;;  %v327_v24 = vmul.u32 %v1382_v48, %v1472_v60 }
  0xc4   : > { %v470_v20 = vshrl.u32 %v465_v58, 16  ;;  %v479_v59 = vadd.s32 %v478_v55, %v468_v54  ;;  %v477_v0 = vadd.s32 %v473_v33, %v469_v45  ;;  %v427_v62 = vsel %vm421_vm11, %v424_v44, %v426_v51 }
  0xc5   : > { %v331_v61 = vsel %vm329_vm2, %v330_v56, %v326_v50  ;;  %v481_v11 = vmul.u32 %v1401_v1, %v427_v62  ;;  %v328_v27 = vadd.s32 %v323_v39, %v304_v37  ;;  %vm236_vm8 = vcmp.lt.s32.totalorder %v1360_v7, 0 }
  0xc6   : > { %v332_v63 = vadd.s32 %v331_v61, %v327_v24  ;;  %v480_v6 = vadd.s32 %v479_v59, %v470_v20  ;;  %vm483_vm3 = vc.u32 %v458_v57, %v477_v0  ;;  %v482_v41 = vadd.s32 %v477_v0, %v458_v57 }
  0xc7   : > { %vm1516_vm9 = vcmp.le.f32.partialorder %v234_v10, 0.7853982  ;;  %vm390_vm10 = vcmp.lt.s32.totalorder %v1364_v14, 0  ;;  %vm1529_vm11 = vcmp.le.f32.partialorder %v388_v17, 0.7853982  ;;  %vm377_vm15 = vweird.f32 %v1360_v7 }
  0xc8   : > { %v333_v42 = vadd.s32 536870912, %v332_v63  ;;  %v484_v8 = vadd.s32 1, %v480_v6  ;;  %vm531_vm0 = vweird.f32 %v1364_v14 }
  0xca   : > { %v1507_v43 = vshrl.u32 %v333_v42, 30  ;;  %v485_v18 = vsel %vm483_vm3, %v484_v8, %v480_v6 }
  0xcb   : > { %v486_v21 = vadd.s32 %v485_v18, %v481_v11 }
  0xcc   : > { %v335_v48 = vshll.u32 %v1507_v43, 30  ;;  %v358_v24 = vsub.s32 4, %v1507_v43 }
  0xcd   : > { %v487_v60 = vadd.s32 536870912, %v486_v21 }
  0xce   : > { %v336_v22 = vsub.s32 %v332_v63, %v335_v48  ;;  %v359_v8 = vsel %vm236_vm8, %v358_v24, %v1507_v43 }
  0xcf   : > { %v1510_v25 = vshrl.u32 %v487_v60, 30 }
  0xd0   : > { %vm337_vm4 = vcmp.lt.s32.totalorder %v336_v22, 0  ;;  %v338_v19 = vsub.s32 0, %v336_v22 }
  0xd1   : > { %v489_v23 = vshll.u32 %v1510_v25, 30  ;;  %v512_v63 = vsub.s32 4, %v1510_v25 }
  0xd2   : > { %v339_v3 = vsel %vm337_vm4, %v338_v19, %v336_v22  ;;  %v361_v19 = vsel %vm1516_vm9, 0, %v359_v8 }
  0xd3   : > { %v340_v4 = vclz %v339_v3  ;;  %v490_v2 = vsub.s32 %v486_v21, %v489_v23 }
  0xd5   : > { %v1062_v58 = vadd.s32 4294967294, %v340_v4  ;;  %vm491_vm5 = vcmp.lt.s32.totalorder %v490_v2, 0  ;;  %v492_v1 = vsub.s32 0, %v490_v2 }
  0xd7   : > { %vm1063_vm6 = vcmp.lt.s32.totalorder %v1062_v58, 0  ;;  %v493_v5 = vsel %vm491_vm5, %v492_v1, %v490_v2 }
  0xd8   : > { %v343_v9 = vsel %vm1063_vm6, 0, %v1062_v58  ;;  %v494_v13 = vclz %v493_v5 }
  0xd9   : > { %v344_v28 = vsub.s32 32, %v343_v9  ;;  %v348_v12 = vsub.s32 4294967266, %v343_v9  ;;  %v345_v31 = vshll.u32 %v336_v22, %v343_v9  ;;  %v513_v22 = vsel %vm390_vm10, %v512_v63, %v1510_v25 }
  0xda   : > { %v1065_v29 = vadd.s32 4294967294, %v494_v13  ;;  %v515_v43 = vsel %vm1529_vm11, 0, %v513_v22  ;;  %v688_v13 = vadd.s32 3, %v361_v19 }
  0xdb   : > { %v346_v32 = vshrl.u32 %v328_v27, %v344_v28  ;;  %v349_v34 = vadd.s32 127, %v348_v12  ;;  %v378_v27 = vand.u32 3, %v361_v19 }
  0xdc   : > { %vm1066_vm7 = vcmp.lt.s32.totalorder %v1065_v29, 0 }
  0xdd   : > { %v347_v35 = vor.u32 %v346_v32, %v345_v31  ;;  %v350_v38 = vshll.u32 %v349_v34, 23  ;;  %v497_v40 = vsel %vm1066_vm7, 0, %v1065_v29  ;;  %v843_v31 = vadd.s32 3, %v515_v43 }
  0xde   : > { %v498_v26 = vsub.s32 32, %v497_v40  ;;  %v502_v45 = vsub.s32 4294967266, %v497_v40  ;;  %v499_v15 = vshll.u32 %v490_v2, %v497_v40  ;;  %v689_v40 = vand.u32 3, %v688_v13 }
  0xdf   : > { %v351_v33 = vor.u32 4788187, %v350_v38  ;;  %v354_v46 = vcvt.s32.f32 %v347_v35  ;;  %v532_v38 = vand.u32 3, %v515_v43  ;;  %vm380_vm12 = vcmp.eq.s32.totalorder %v378_v27, 0 }
  0xe0   : > { %v500_v30 = vshrl.u32 %v482_v41, %v498_v26  ;;  %v503_v36 = vadd.s32 127, %v502_v45  ;;  %vm383_vm13 = vcmp.eq.s32.totalorder %v378_v27, 2  ;;  %vm379_vm14 = vcmp.lt.s32.totalorder %v378_v27, 2 }
  0xe1   : > { %v352_v16 = vand.u32 2147483647, %v351_v33  ;;  %vm533_vm1 = vcmp.lt.s32.totalorder %v532_v38, 2  ;;  %vm691_vm2 = vcmp.eq.s32.totalorder %v689_v40, 0  ;;  %vm534_vm3 = vcmp.eq.s32.totalorder %v532_v38, 0 }
  0xe2   : > { %v501_v37 = vor.u32 %v500_v30, %v499_v15  ;;  %v504_v39 = vshll.u32 %v503_v36, 23  ;;  %v844_v15 = vand.u32 3, %v843_v31  ;;  %vm537_vm4 = vcmp.eq.s32.totalorder %v532_v38, 2 }
  0xe3   : > { %v355_v47 = vmul.f32 %v354_v46, %v352_v16 }
  0xe4   : > { %v505_v49 = vor.u32 4788187, %v504_v39  ;;  %v508_v53 = vcvt.s32.f32 %v501_v37  ;;  %vm845_vm5 = vcmp.lt.s32.totalorder %v844_v15, 2  ;;  %vm846_vm6 = vcmp.eq.s32.totalorder %v844_v15, 0 }
  0xe5   : > { %v356_v50 = vxor.u32 2147483648, %v355_v47  ;;  %vm849_vm7 = vcmp.eq.s32.totalorder %v844_v15, 2 }
  0xe6   : > { %v506_v52 = vand.u32 2147483647, %v505_v49 }
  0xe7   : > { %v357_v55 = vsel %vm236_vm8, %v356_v50, %v355_v47  ;;  %vm694_vm8 = vcmp.eq.s32.totalorder %v689_v40, 2 }
  0xe8   : > { %v360_v44 = vsel %vm1516_vm9, %v1360_v7, %v357_v55  ;;  %v509_v51 = vmul.f32 %v508_v53, %v506_v52  ;;  %vm690_vm9 = vcmp.lt.s32.totalorder %v689_v40, 2 }
  0xe9   : > { %v362_v56 = vmul.f32 %v360_v44, %v360_v44 }
  0xea   : > { %v510_v57 = vxor.u32 2147483648, %v509_v51 }
  0xeb   : > { %v363_v20 = vmul.f32 -0.001358992, %v362_v56  ;;  %v370_v59 = vmul.f32 -0.00019511016, %v362_v56 }
  0xec   : > { %v511_v61 = vsel %vm390_vm10, %v510_v57, %v509_v51  ;;  %vm863_vm10 = vcmask 523264  }
  0xed   : > { %v364_v0 = vadd.f32 0.041655596, %v363_v20  ;;  %v371_v62 = vadd.f32 0.008332121, %v370_v59  ;;  %v514_v6 = vsel %vm1529_vm11, %v1364_v14, %v511_v61 }
  0xee   : > { %v516_v42 = vmul.f32 %v514_v6, %v514_v6 }
  0xef   : > { %v365_v17 = vmul.f32 %v364_v0, %v362_v56  ;;  %v372_v11 = vmul.f32 %v371_v62, %v362_v56 }
  0xf0   : > { %v517_v18 = vmul.f32 -0.001358992, %v516_v42  ;;  %v524_v21 = vmul.f32 -0.00019511016, %v516_v42 }
  0xf1   : > { %v366_v48 = vadd.f32 -0.4999988, %v365_v17  ;;  %v373_v60 = vadd.f32 -0.16666654, %v372_v11 }
  0xf2   : > { %v518_v23 = vadd.f32 0.041655596, %v517_v18  ;;  %v525_v3 = vadd.f32 0.008332121, %v524_v21 }
  0xf3   : > { %v367_v4 = vmul.f32 %v366_v48, %v362_v56  ;;  %v374_v2 = vmul.f32 %v373_v60, %v362_v56 }
  0xf4   : > { %v519_v58 = vmul.f32 %v518_v23, %v516_v42  ;;  %v526_v1 = vmul.f32 %v525_v3, %v516_v42 }
  0xf5   : > { %v368_v5 = vadd.f32 1.0, %v367_v4  ;;  %v375_v9 = vadd.f32 1.0, %v374_v2 }
  0xf6   : > { %v520_v28 = vadd.f32 -0.4999988, %v519_v58  ;;  %v527_v12 = vadd.f32 -0.16666654, %v526_v1 }
  0xf7   : > { %v376_v29 = vmul.f32 %v375_v9, %v360_v44  ;;  %v384_v25 = vxor.u32 2147483648, %v368_v5 }
  0xf8   : > { %v521_v32 = vmul.f32 %v520_v28, %v516_v42  ;;  %v528_v34 = vmul.f32 %v527_v12, %v516_v42 }
  0xf9   : > { %v381_v35 = vxor.u32 2147483648, %v376_v29  ;;  %v385_v33 = vsel %vm383_vm13, %v384_v25, %v376_v29  ;;  %v696_v51 = vsel %vm694_vm8, %v384_v25, %v376_v29 }
  0xfa   : > { %v522_v41 = vadd.f32 1.0, %v521_v32  ;;  %v529_v26 = vadd.f32 1.0, %v528_v34 }
  0xfb   : > { %v382_v45 = vsel %vm380_vm12, %v368_v5, %v381_v35  ;;  %v693_v39 = vsel %vm691_vm2, %v368_v5, %v381_v35 }
  0xfc   : > { %v386_v30 = vsel %vm379_vm14, %v382_v45, %v385_v33  ;;  %v530_v36 = vmul.f32 %v529_v26, %v514_v6  ;;  %v538_v16 = vxor.u32 2147483648, %v522_v41  ;;  %v697_v57 = vsel %vm690_vm9, %v693_v39, %v696_v51 }
  0xfd   : > { %v387_v46 = vsel %vm377_vm15, nan, %v386_v30  ;;  %v698_v10 = vsel %vm377_vm15, nan, %v697_v57 }
  0xfe   : > { %v535_v37 = vxor.u32 2147483648, %v530_v36  ;;  %v539_v49 = vsel %vm537_vm4, %v538_v16, %v530_v36  ;;  %v851_v52 = vsel %vm849_vm7, %v538_v16, %v530_v36  ;;  %v542_v54 = vpack.c.bf16 %v387_v46, %v387_v46 }
  0xff   : > { %v854_v62 = vpack.c.bf16 %v698_v10, %v698_v10 }
 0x100   : > { %v536_v47 = vsel %vm534_vm3, %v522_v41, %v535_v37  ;;  %v848_v50 = vsel %vm846_vm6, %v522_v41, %v535_v37  ;;  %v858_v20 = vunpack.c.l.b16 %v542_v54 }
 0x101   : > { %v540_v53 = vsel %vm533_vm1, %v536_v47, %v539_v49  ;;  %v852_v55 = vsel %vm845_vm5, %v848_v50, %v851_v52  ;;  %v878_v6 = vunpack.c.l.b16 %v854_v62 }
 0x102   : > { %v541_v44 = vsel %vm531_vm0, nan, %v540_v53  ;;  %v853_v24 = vsel %vm531_vm0, nan, %v852_v55 }
 0x103   : > { %v543_v56 = vpack.c.bf16 %v541_v44, %v541_v44  ;;  %v855_v0 = vpack.c.bf16 %v853_v24, %v853_v24 }
 0x105   : > { %v859_v59 = vunpack.c.l.b16 %v543_v56  ;;  %v879_v63 = vunpack.c.l.b16 %v855_v0 }
 0x107   : > { %v860_v61 = vpack.c.b16 %v859_v59, %v858_v20  ;;  %v880_v42 = vpack.c.b16 %v879_v63, %v878_v6 }
 0x109   : > { %861 = vrot.lane.b32.xlu1 %v860_v61, %s1274_s6 }
 0x111   : > { %881 = vrot.lane.b32.xlu1 %v880_v42, %s1274_s6 }
 0x17b   : > { %v862_v7 = vpop.permute.xlu1 %861 }
 0x17c   : > { %v866_v14 = vsel %vm863_vm10, %v860_v61, %v862_v7 }
 0x17d   : > { %v868_v8 = vunpack.c.l.b16 %v866_v14  ;;  %v869_v17 = vunpack.c.h.b16 %v866_v14 }
 0x17f   : > { %v870_v11 = vpack.c.b16 %v868_v8, %v868_v8  ;;  %v871_v18 = vpack.c.b16 %v869_v17, %v869_v17 }
 0x181   : > { %874 = vst [vmem:[%s194_s19] sm:$0xf] %v870_v11 }
 0x182   : > { %875 = vst [vmem:[%s194_s19 + $0x4] sm:$0xf] %v871_v18 }
 0x183   : > { %v882_v21 = vpop.permute.xlu1 %881 }
 0x184   : > { %1182 = shalt.err (!%p1179_p5)
}
 0x185   : > { %s1275_s8 = smov 4   ;;  %v885_v48 = vsel %vm863_vm10, %v880_v42, %v882_v21  ;;  %s201_s19 = scalar_lea.vmem [#allocation4], %s1057_s9 }
 0x186   : > { %1084 = dma.vmem_to_hbm [thread:$0]  (%p1336_p4), %s916_s21, 128, %s918_s23, %s896_s28, %s1274_s6, %s1274_s6, %s1275_s8   ;;  %v887_v60 = vunpack.c.l.b16 %v885_v48  ;;  %v888_v22 = vunpack.c.h.b16 %v885_v48 }
 0x187   : > { %s934_s15 = sshll.u32 %s201_s19, 4  ;;  %s936_s26 = sshll.u32 %s933_s27, 4  ;;  %s935_s15 = int_to_ptr.vmem [resolvable:$true] %s934_s15  ;;  %s937_s26 = int_to_ptr.hbm [resolvable:$true] %s936_s26 }
 0x188   : > { %v889_v19 = vpack.c.b16 %v887_v60, %v887_v60  ;;  %v890_v23 = vpack.c.b16 %v888_v22, %v888_v22  ;;  %s901_s29 = scalar_lea.sflag [#allocation5], %s1562_s7  ;;  %s1197_s30 = sshra.s32 %s937_s26, 4  ;;  %s1198_s30 = int_to_ptr.hbm [resolvable:$true] %s1197_s30 }
 0x189   : > { %s1199_s4 = scalar_lea.hbm %s1198_s30, 8  ;;  %s1203_s23 = scalar_lea.hbm %s1631_s3, 16 }
 0x18a   : > { %893 = vst [vmem:[%s201_s19] sm:$0xf] %v889_v19  ;;  %p1200_p6 = scmp.ne.s32.totalorder %s1198_s30, %s1199_s4  ;;  %p1204_p10 = scmp.lt.s32.totalorder %s1198_s30, %s1631_s3 }
 0x18b   : > { %894 = vst [vmem:[%s201_s19 + $0x4] sm:$0xf] %v890_v23  ;;  %p1205_p11 = scmp.lt.s32.totalorder %s1203_s23, %s1199_s4 }
 0x18c   : > { %p1201_p7 = pnand %p1200_p6, %p1336_p4 }
 0x18d   : > { %p1206_p12 = por %p1205_p11, %p1204_p10 }
 0x18e   : > { %p1202_p9 = pneg %p1201_p7 }
 0x190   : > { %p1207_p13 = pnand %p1206_p12, %p1202_p9 }
 0x192   : > { %1210 = shalt.err (!%p1207_p13)
}
 0x193   : > { %1085 = dma.vmem_to_hbm [thread:$0]  (%p1336_p4), %s935_s15, 128, %s937_s26, %s901_s29, %s1274_s6, %s1274_s6, %s1275_s8  }
 0x194 PF: > { %p1095_p0 = scmp.ge.s32.totalorder %s1265_s17, 2  ;;  %s951_s7 = sand.u32 1, %s1245_s12  }
 0x195   : > { %s952_s5 = scalar_lea.sflag [#allocation3], %s951_s7 }
 0x196   : > { %p1089_p1 = pnand %p1095_p0, %p1343_p8 }
 0x198   : > { %p1090_p2 = pneg %p1089_p1 }
 0x19a   : > { %1236 = dma.done.wait (%p1090_p2), %s952_s5, 128  }
 0x19b   : > { %1238 = vsyncadd (%p1090_p2), %s952_s5, 4294967168  ;;  %s962_s10 = scalar_lea.sflag [#allocation5], %s951_s7 }
 0x19c   : > { %1240 = dma.done.wait (%p1090_p2), %s962_s10, 128  }
 0x19d   : > { %1242 = vsyncadd (%p1090_p2), %s962_s10, 4294967168  ;;  %s20_s17 = sadd.s32 1, %s1265_s17   ;;  %s1638_s12 = smov %s1249_s13 }
 0x19e   : > { %p17_p3 = scmp.ge.s32.totalorder %s20_s17, 4   ;;  %s1639_s13 = smov %s1253_s14 }
 0x19f   : > { %s1640_s14 = smov %s1349_s25  ;;  %s1641_s15 = smov %s1261_s16 }
 0x1a0   : > { %s1642_s16 = smov %s1644_s20  ;;  %19 = sbr.rel (!%p17_p3) target bundleno = 6 (0x6), region = 80 }
 0x1a5   :  { %968 = vsyncpa [#allocation3], 1 }
 0x1a6   :  { %970 = vsyncpa [#allocation3 + $0x1], 1 }
 0x1a7   :  { %971 = vsyncpa [#allocation5], 1 }
 0x1a8   :  { %973 = vsyncpa [#allocation5 + $0x1], 1 }

</bundles_post_ra>
